<compile_context>
chip_gen: v7x
topology: tpu7x:2x2x1
jax: 0.10.0
libtpu: 0.0.40
codegen_flags: <defaults>
</compile_context>

<pallas_src>
import functools

import jax
import jax.numpy as jnp
from jax.experimental import pallas as pl
from jax.experimental.pallas import tpu as pltpu


# ----------------------------------------------------------------------------- helpers
def _round_up(n, m):
    return ((n + m - 1) // m) * m


def _cdiv(a, b):
    return (a + b - 1) // b


def _vmem_capacity_bytes():
    try:
        info = pltpu.get_tpu_info()
        cap = getattr(info, "vmem_capacity_bytes", None)
        if cap:
            return int(cap)
    except Exception:
        pass
    # get_tpu_info unavailable: key the default off the detected chip generation.
    try:
        kind = jax.devices()[0].device_kind.lower()
    except Exception:
        kind = ""
    if "v7" in kind:
        return 64 * 1024 * 1024      # v7x: 64 MiB per TensorCore
    return 128 * 1024 * 1024         # v5e / v6e: 128 MiB


def _pick_hw_tile(hw, c_pad, itemsize, per_buf_bytes, cap=None):
    """Largest lane-dense (multiple-of-128) HW tile whose (C, T) slab fits per_buf_bytes."""
    t_max = max(128, ((per_buf_bytes // max(1, c_pad * itemsize)) // 128) * 128)
    t = min(_round_up(hw, 128), t_max)
    if cap is not None:
        t = min(t, max(128, (int(cap) // 128) * 128))
    return t


# ----------------------------------------------------------------------------- kernels
def _pcsa_fused_kernel(x_ref, w1bar_ref, w2s_ref, b2s_ref, scal_ref, o_ref, *, inv_hw):
    # x block: (1, C, HW) for the current batch element (full extent, no padding).
    xb = x_ref[0]                                                        # (C, HW) native dtype

    # AdaptiveAvgPool2d((1,1)): per-channel spatial mean (f32 accumulation).
    p = jnp.sum(xb.astype(jnp.float32), axis=1, keepdims=True) * inv_hw  # (C, 1)

    # mean(q), q = W1 @ p + b1   ==   colmean(W1)·p + mean(b1)   (W1 GEMM eliminated)
    mean_q = jnp.sum(w1bar_ref[...] * p, keepdims=True) + scal_ref[0]    # (1, 1)

    # k' = (w1d*W2) @ p + w1d*b2   (Conv1d scalar folded into the linear)
    kv = jnp.dot(w2s_ref[...], p, preferred_element_type=jnp.float32) + b2s_ref[...]  # (C, 1)

    # attn = sigmoid(k' * mean(q) + b1d)
    gate = jax.nn.sigmoid(kv * mean_q + scal_ref[1])                     # (C, 1) f32

    # Gate in native dtype; lane-dense store (one masked tail vreg per row if HW%128!=0).
    o_ref[0] = xb * gate.astype(o_ref.dtype)


def _channel_sum_kernel(x_ref, o_ref, *, hw, tile, n_inner, needs_mask):
    # grid = (B, n_split, n_inner); reduction axis (inner HW tiles) is last & 'arbitrary'.
    @pl.when(pl.program_id(2) == 0)
    def _():
        o_ref[...] = jnp.zeros_like(o_ref)

    xv = x_ref[...].astype(jnp.float32)                    # (1, C, tile)
    if needs_mask:
        # Ragged tail and/or clamped redundant block: mask lanes past HW using the
        # *unclamped* logical offset of this grid step.
        start = (pl.program_id(1) * n_inner + pl.program_id(2)) * tile
        lane = jax.lax.broadcasted_iota(jnp.int32, xv.shape, 2)
        xv = jnp.where(start + lane < hw, xv, 0.0)
    o_ref[...] += jnp.sum(xv, axis=2, keepdims=True)


def _scale_kernel(g_ref, x_ref, o_ref):
    # (1, C, 1) gate broadcast over a (1, C, T) activation tile. No tail mask needed:
    # out-of-bounds writes of the boundary block are dropped by Pallas.
    o_ref[...] = x_ref[...] * g_ref[...].astype(o_ref.dtype)


# ----------------------------------------------------------------------------- wrapper
def pcsa_forward(x, w1, b1, w2, b2, w1d, b1d, *,
                 force_two_pass=False, donate_x=False, max_tile=None):
    """x: (B, C, H, W). Returns (B, C, H, W). Matches PCSA.forward."""
    B, C, H, W = x.shape
    HW = H * W
    itemsize = x.dtype.itemsize
    xr = x.reshape(B, C, HW)

    # ---- fold parameters (exact up to FP reassociation) ----
    w1bar = jnp.mean(w1.astype(jnp.float32), axis=0)        # (C,)  colmean(W1)
    b1bar = jnp.mean(b1.astype(jnp.float32))                # ()    mean(b1)
    w1d_s = jnp.asarray(w1d, jnp.float32).reshape(())
    b1d_s = jnp.asarray(b1d, jnp.float32).reshape(())
    w2s = w1d_s * w2.astype(jnp.float32)                    # (C, C)
    b2s = w1d_s * b2.astype(jnp.float32)                    # (C,)

    vmem_cap = _vmem_capacity_bytes()
    c_pad = _round_up(C, 8)

    # ---- path selection: fused single pass iff double-buffered slabs fit VMEM ----
    slab = c_pad * _round_up(HW, 128) * itemsize             # VMEM footprint of one x block
    fused_bytes = 4 * slab + 2 * (C * C * 4 + 2 * C * 4) + (2 << 20)
    use_fused = (not force_two_pass) and fused_bytes <= int(0.85 * vmem_cap)

    if use_fused:
        w1bar_col = w1bar.reshape(C, 1)
        b2s_col = b2s.reshape(C, 1)
        scal = jnp.stack([b1bar, b1d_s]).astype(jnp.float32)     # (2,) in SMEM

        kernel = functools.partial(_pcsa_fused_kernel, inv_hw=1.0 / HW)
        vmem_limit = int(min(0.9 * vmem_cap, max(32 << 20, fused_bytes + (4 << 20))))
        cost = pl.CostEstimate(
            flops=int(3 * B * C * HW + 2 * B * C * C),
            transcendentals=int(B * C),
            bytes_accessed=int(2 * B * C * HW * itemsize + C * C * 4 + 4 * C * 4),
        )

        out = pl.pallas_call(
            kernel,
            out_shape=jax.ShapeDtypeStruct((B, C, HW), x.dtype),
            grid_spec=pltpu.PrefetchScalarGridSpec(
                num_scalar_prefetch=0,
                grid=(B,),
                in_specs=[
                    pl.BlockSpec((1, C, HW), lambda b: (b, 0, 0)),          # x slab (full extent)
                    pl.BlockSpec((C, 1), lambda b: (0, 0)),                 # colmean(W1)
                    pl.BlockSpec((C, C), lambda b: (0, 0)),                 # w1d*W2
                    pl.BlockSpec((C, 1), lambda b: (0, 0)),                 # w1d*b2
                    pl.BlockSpec(memory_space=pltpu.MemorySpace.SMEM),      # [mean(b1), b1d]
                ],
                out_specs=pl.BlockSpec((1, C, HW), lambda b: (b, 0, 0)),
            ),
            compiler_params=pltpu.CompilerParams(
                dimension_semantics=("parallel",),
                vmem_limit_bytes=vmem_limit),
            cost_estimate=cost,
            input_output_aliases=({0: 0} if donate_x else {}),
        )(xr, w1bar_col, w2s, b2s_col, scal)

        return out.reshape(B, C, H, W)

    # ---------------- two-pass fallback (slab exceeds the VMEM budget) ----------------
    per_buf = (4 << 20) if vmem_cap <= (64 << 20) else (8 << 20)
    # Pass 2 holds 2x in + 2x out tiles; pass 1 only 2x in, so it gets a 2x larger tile.
    T2 = _pick_hw_tile(HW, c_pad, itemsize, per_buf, cap=max_tile)
    T1 = _pick_hw_tile(HW, c_pad, itemsize, 2 * per_buf, cap=max_tile)

    # ---- Pass 1: per-channel spatial sums.  The HW tiles are split 2-way along a
    #      *parallel* grid axis so both v7x TensorCores work even when B == 1; the
    #      partial sums are combined in the wrapper. ----
    n_t1 = _cdiv(HW, T1)
    n_split = 2 if n_t1 >= 2 else 1
    n_inner = _cdiv(n_t1, n_split)
    needs_mask = (HW % T1 != 0) or (n_split * n_inner != n_t1)

    def x1_map(b, s, t):
        # Clamp so the DMA never targets a fully out-of-range block (odd tile count);
        # the kernel masks the redundant read using the unclamped offset.
        return (b, 0, jnp.minimum(s * n_inner + t, n_t1 - 1))

    sum_kernel = functools.partial(
        _channel_sum_kernel, hw=HW, tile=T1, n_inner=n_inner, needs_mask=needs_mask)

    partial_sums = pl.pallas_call(
        sum_kernel,
        out_shape=jax.ShapeDtypeStruct((B * n_split, C, 1), jnp.float32),
        grid_spec=pltpu.PrefetchScalarGridSpec(
            num_scalar_prefetch=0,
            grid=(B, n_split, n_inner),
            in_specs=[pl.BlockSpec((1, C, T1), x1_map)],
            out_specs=pl.BlockSpec((1, C, 1), lambda b, s, t: (b * n_split + s, 0, 0)),
        ),
        compiler_params=pltpu.CompilerParams(
            dimension_semantics=("parallel", "parallel", "arbitrary"),
            vmem_limit_bytes=int(min(0.9 * vmem_cap,
                                     max(32 << 20, 3 * c_pad * T1 * itemsize + (8 << 20))))),
        cost_estimate=pl.CostEstimate(
            flops=int(B * C * HW), transcendentals=0,
            bytes_accessed=int(B * C * HW * itemsize + B * n_split * C * 4)),
    )(xr)

    # Pooled-vector linears as one tiny batched GEMM in the wrapper (W1 GEMM and
    # Conv1d affine already folded algebraically).
    sums = jnp.sum(partial_sums.reshape(B, n_split, C, 1), axis=1)   # (B, C, 1) f32
    p = sums[:, :, 0] * (1.0 / HW)                                   # (B, C)
    mean_q = p @ w1bar + b1bar                                       # (B,)
    kv = p @ w2s.T + b2s                                             # (B, C)
    gate = jax.nn.sigmoid(kv * mean_q[:, None] + b1d_s)              # (B, C) f32
    gate = gate.reshape(B, C, 1)

    # ---- Pass 2: HW-tiled elementwise scale (pure HBM streaming, no padding). ----
    n_t2 = _cdiv(HW, T2)
    out = pl.pallas_call(
        _scale_kernel,
        out_shape=jax.ShapeDtypeStruct((B, C, HW), x.dtype),
        grid_spec=pltpu.PrefetchScalarGridSpec(
            num_scalar_prefetch=0,
            grid=(B, n_t2),
            in_specs=[
                pl.BlockSpec((1, C, 1), lambda b, t: (b, 0, 0)),    # gate (resident)
                pl.BlockSpec((1, C, T2), lambda b, t: (b, 0, t)),   # x tile
            ],
            out_specs=pl.BlockSpec((1, C, T2), lambda b, t: (b, 0, t)),
        ),
        compiler_params=pltpu.CompilerParams(
            dimension_semantics=("parallel", "parallel"),
            vmem_limit_bytes=int(min(0.9 * vmem_cap,
                                     max(32 << 20, 5 * c_pad * T2 * itemsize + (8 << 20))))),
        cost_estimate=pl.CostEstimate(
            flops=int(B * C * HW), transcendentals=0,
            bytes_accessed=int(2 * B * C * HW * itemsize + B * C * 4)),
        input_output_aliases=({1: 0} if donate_x else {}),
    )(gate, xr)

    return out.reshape(B, C, H, W)


# ----------------------------------------------------------------------------- reference
def pcsa_reference(x, w1, b1, w2, b2, w1d, b1d):
    """Pure-JAX reference mirroring the PyTorch forward literally."""
    p = x.mean(axis=(2, 3))                                  # (B, C)
    q = p @ w1.T + b1                                        # (B, C)
    k = p @ w2.T + b2                                        # (B, C)
    attn = k[:, :, None] * q[:, None, :]                     # (B, C, C) = k^T @ q
    attn = attn.mean(axis=2)                                 # AdaptiveAvgPool1d(1)
    attn = w1d * attn + b1d                                  # Conv1d(1,1,1,1)
    attn = jax.nn.sigmoid(attn)
    return x * attn[:, :, None, None]


if __name__ == "__main__":
    B, C, H, W = 2, 16, 16, 16

    key = jax.random.PRNGKey(0)
    kx, k1, k2, k3, k4, k5, k6, kx2, kx3 = jax.random.split(key, 9)

    x = jax.random.normal(kx, (B, C, H, W), dtype=jnp.float32)

    bound = 1.0 / jnp.sqrt(C)
    w1 = jax.random.uniform(k1, (C, C), jnp.float32, -bound, bound)
    b1 = jax.random.uniform(k2, (C,), jnp.float32, -bound, bound)
    w2 = jax.random.uniform(k3, (C, C), jnp.float32, -bound, bound)
    b2 = jax.random.uniform(k4, (C,), jnp.float32, -bound, bound)
    w1d = jax.random.uniform(k5, (), jnp.float32, -1.0, 1.0)   # Conv1d(1,1,1) weight
    b1d = jax.random.uniform(k6, (), jnp.float32, -1.0, 1.0)   # Conv1d(1,1,1) bias

    ref = pcsa_reference(x, w1, b1, w2, b2, w1d, b1d)

    # Fused single-pass path (HW a multiple of 128).
    out = jax.block_until_ready(pcsa_forward(x, w1, b1, w2, b2, w1d, b1d))
    assert out.shape == (B, C, H, W)
    assert jnp.allclose(out, ref, atol=1e-5, rtol=1e-5), "fused path mismatch"

    # Two-pass fallback path (forced), tile-aligned HW.
    out_tp = jax.block_until_ready(
        pcsa_forward(x, w1, b1, w2, b2, w1d, b1d, force_two_pass=True))
    assert jnp.allclose(out_tp, ref, atol=1e-5, rtol=1e-5), "two-pass mismatch"

    # Non-128-multiple spatial size: exercises the un-padded ragged-tail handling
    # (masked pass-1 reduction; dropped OOB writes in pass 2; masked fused stores).
    x2 = jax.random.normal(kx2, (B, C, 7, 9), dtype=jnp.float32)
    ref2 = pcsa_reference(x2, w1, b1, w2, b2, w1d, b1d)
    out2 = jax.block_until_ready(pcsa_forward(x2, w1, b1, w2, b2, w1d, b1d))
    assert jnp.allclose(out2, ref2, atol=1e-5, rtol=1e-5), "ragged fused mismatch"
    out2_tp = jax.block_until_ready(
        pcsa_forward(x2, w1, b1, w2, b2, w1d, b1d, force_two_pass=True))
    assert jnp.allclose(out2_tp, ref2, atol=1e-5, rtol=1e-5), "ragged two-pass mismatch"

    # Odd HW-tile count with a forced small tile: exercises the pass-1 2-way split
    # (clamped redundant block fully masked) and the pass-2 boundary tile.
    x3 = jax.random.normal(kx3, (B, C, 16, 20), dtype=jnp.float32)   # HW = 320
    ref3 = pcsa_reference(x3, w1, b1, w2, b2, w1d, b1d)
    out3 = jax.block_until_ready(
        pcsa_forward(x3, w1, b1, w2, b2, w1d, b1d, force_two_pass=True, max_tile=128))
    assert jnp.allclose(out3, ref3, atol=1e-5, rtol=1e-5), "split/ragged two-pass mismatch"

    print("KERNEL_OK")
</pallas_src>

<mosaic_0001>
module attributes {stable_mosaic.version = 11 : i64} {
  func.func @_pcsa_fused_kernel(%arg0: i32, %arg1: memref<1x16x256xf32, #tpu.memory_space<vmem>>, %arg2: memref<16x1xf32, #tpu.memory_space<vmem>>, %arg3: memref<16x16xf32, #tpu.memory_space<vmem>>, %arg4: memref<16x1xf32, #tpu.memory_space<vmem>>, %arg5: memref<2xf32, #tpu.memory_space<smem>>, %arg6: memref<1x16x256xf32, #tpu.memory_space<vmem>>) attributes {dimension_semantics = [#tpu.dimension_semantics<parallel>], iteration_bounds = array<i64: 2>, scalar_prefetch = 0 : i64, scratch_operands = 0 : i64, tpu.core_type = #tpu.core_type<tc>, window_params = [{transform_indices = @transform_0, window_bounds = array<i64: 1, 16, 256>}, {pipeline_mode = #tpu.pipeline_mode<synchronous>, transform_indices = @transform_1, window_bounds = array<i64: 16, 1>}, {pipeline_mode = #tpu.pipeline_mode<synchronous>, transform_indices = @transform_2, window_bounds = array<i64: 16, 16>}, {pipeline_mode = #tpu.pipeline_mode<synchronous>, transform_indices = @transform_3, window_bounds = array<i64: 16, 1>}, {transform_indices = @transform_4, window_bounds = array<i64: 2>}, {transform_indices = @transform_5, window_bounds = array<i64: 1, 16, 256>}]} {
    %c0 = arith.constant 0 : index
    %c0_0 = arith.constant 0 : index
    %c0_1 = arith.constant 0 : index
    %0 = vector.load %arg1[%c0, %c0_0, %c0_1] : memref<1x16x256xf32, #tpu.memory_space<vmem>>, vector<1x16x256xf32>
    %1 = vector.shape_cast %0 : vector<1x16x256xf32> to vector<16x256xf32>
    %cst = arith.constant dense<0.000000e+00> : vector<16xf32>
    %2 = vector.multi_reduction <add>, %1, %cst [1] : vector<16x256xf32> to vector<16xf32>
    %3 = vector.shape_cast %2 : vector<16xf32> to vector<16x1xf32>
    %cst_2 = arith.constant 3.906250e-03 : f32
    %4 = vector.broadcast %cst_2 : f32 to vector<16x1xf32>
    %5 = arith.mulf %3, %4 : vector<16x1xf32>
    %c0_3 = arith.constant 0 : index
    %c0_4 = arith.constant 0 : index
    %6 = vector.load %arg2[%c0_3, %c0_4] : memref<16x1xf32, #tpu.memory_space<vmem>>, vector<16x1xf32>
    %7 = arith.mulf %6, %5 : vector<16x1xf32>
    %8 = vector.shape_cast %7 : vector<16x1xf32> to vector<1x16x1xf32>
    %cst_5 = arith.constant dense<0.000000e+00> : vector<1xf32>
    %9 = vector.multi_reduction <add>, %8, %cst_5 [1, 2] : vector<1x16x1xf32> to vector<1xf32>
    %10 = vector.shape_cast %9 : vector<1xf32> to vector<1x1x1xf32>
    %11 = vector.extract %10[0, 0, 0] : f32 from vector<1x1x1xf32>
    %12 = vector.broadcast %11 : f32 to vector<1x1xf32>
    %c0_6 = arith.constant 0 : index
    %13 = memref.load %arg5[%c0_6] : memref<2xf32, #tpu.memory_space<smem>>
    %14 = vector.broadcast %13 : f32 to vector<1x1xf32>
    %15 = arith.addf %12, %14 : vector<1x1xf32>
    %c0_7 = arith.constant 0 : index
    %c0_8 = arith.constant 0 : index
    %16 = vector.load %arg3[%c0_7, %c0_8] : memref<16x16xf32, #tpu.memory_space<vmem>>, vector<16x16xf32>
    %cst_9 = arith.constant dense<0.000000e+00> : vector<16x1xf32>
    %17 = tpu.matmul %16, %5, %cst_9 {dimension_numbers = #tpu.dot_dimension_numbers<[1], [0], [0], [1], [0, 0, 1, 1], [], []>} : vector<16x16xf32>, vector<16x1xf32>, vector<16x1xf32> -> vector<16x1xf32>
    %c0_10 = arith.constant 0 : index
    %c0_11 = arith.constant 0 : index
    %18 = vector.load %arg4[%c0_10, %c0_11] : memref<16x1xf32, #tpu.memory_space<vmem>>, vector<16x1xf32>
    %19 = arith.addf %17, %18 : vector<16x1xf32>
    %20 = vector.broadcast %15 : vector<1x1xf32> to vector<16x1xf32>
    %21 = arith.mulf %19, %20 : vector<16x1xf32>
    %c1 = arith.constant 1 : index
    %22 = memref.load %arg5[%c1] : memref<2xf32, #tpu.memory_space<smem>>
    %23 = vector.broadcast %22 : f32 to vector<16x1xf32>
    %24 = arith.addf %21, %23 : vector<16x1xf32>
    %25 = arith.negf %24 : vector<16x1xf32>
    %26 = math.exp %25 : vector<16x1xf32>
    %cst_12 = arith.constant 1.000000e+00 : f32
    %27 = vector.broadcast %cst_12 : f32 to vector<16x1xf32>
    %28 = arith.addf %27, %26 : vector<16x1xf32>
    %29 = arith.divf %27, %28 : vector<16x1xf32>
    %30 = vector.broadcast %29 : vector<16x1xf32> to vector<16x256xf32>
    %31 = arith.mulf %1, %30 : vector<16x256xf32>
    %c0_13 = arith.constant 0 : index
    %c0_14 = arith.constant 0 : index
    %c0_15 = arith.constant 0 : index
    %32 = vector.load %arg6[%c0_13, %c0_14, %c0_15] : memref<1x16x256xf32, #tpu.memory_space<vmem>>, vector<1x16x256xf32>
    %33 = vector.shape_cast %32 : vector<1x16x256xf32> to vector<16x256xf32>
    %34 = vector.shape_cast %31 : vector<16x256xf32> to vector<1x16x256xf32>
    tpu.vector_store %arg6[%c0_13, %c0_14, %c0_15], %34 {strides = array<i32>} : memref<1x16x256xf32, #tpu.memory_space<vmem>>, vector<1x16x256xf32>,
    return
  }
  func.func @transform_0(%arg0: i32) -> (i32, i32, i32) {
    %c0_i32 = arith.constant 0 : i32
    %c0_i32_0 = arith.constant 0 : i32
    %c0_i32_1 = arith.constant 0 : i32
    return %arg0, %c0_i32, %c0_i32_0 : i32, i32, i32
  }
  func.func @transform_1(%arg0: i32) -> (i32, i32) {
    %c0_i32 = arith.constant 0 : i32
    %c0_i32_0 = arith.constant 0 : i32
    %c0_i32_1 = arith.constant 0 : i32
    return %c0_i32, %c0_i32_0 : i32, i32
  }
  func.func @transform_2(%arg0: i32) -> (i32, i32) {
    %c0_i32 = arith.constant 0 : i32
    %c0_i32_0 = arith.constant 0 : i32
    %c0_i32_1 = arith.constant 0 : i32
    return %c0_i32, %c0_i32_0 : i32, i32
  }
  func.func @transform_3(%arg0: i32) -> (i32, i32) {
    %c0_i32 = arith.constant 0 : i32
    %c0_i32_0 = arith.constant 0 : i32
    %c0_i32_1 = arith.constant 0 : i32
    return %c0_i32, %c0_i32_0 : i32, i32
  }
  func.func @transform_4(%arg0: i32) -> i32 {
    %c0_i32 = arith.constant 0 : i32
    %c0_i32_0 = arith.constant 0 : i32
    return %c0_i32 : i32
  }
  func.func @transform_5(%arg0: i32) -> (i32, i32, i32) {
    %c0_i32 = arith.constant 0 : i32
    %c0_i32_0 = arith.constant 0 : i32
    %c0_i32_1 = arith.constant 0 : i32
    return %arg0, %c0_i32, %c0_i32_0 : i32, i32, i32
  }
}

</mosaic_0001>

<bundles_post_ra>
// kernel: tpu_custom_call.1
= control target key start
LH: loop header
LB: loop body
LE: loop exit
PB: predicated region body
PF: predicated region fallthrough
CT: control target
= control target key end

     0   :  { %10 = vsyncpa [#allocation3], 0  ;;  %s1007_s0 = inlined_call_operand.hbm [shape: f32[2,16,256], index: 0, kind: input, shape index: {}]   ;;  %s1008_s1 = inlined_call_operand.vmem [shape: f32[16,1], index: 1, kind: input, shape index: {}]   ;;  %s1009_s2 = inlined_call_operand.vmem [shape: f32[16,16], index: 2, kind: input, shape index: {}]   ;;  %s1010_s3 = inlined_call_operand.vmem [shape: f32[16,1], index: 3, kind: input, shape index: {}]   ;;  %s1011_s4 = inlined_call_operand.vmem [shape: f32[2], index: 4, kind: input, shape index: {}]   ;;  %s1012_s5 = inlined_call_operand.hbm [shape: f32[2,16,256], index: 5, kind: output, shape index: {}]  }
   0x1   :  { %12 = vsyncpa [#allocation3 + $0x1], 0 }
   0x2   :  { %13 = vsyncpa [#allocation5], 0 }
   0x3   :  { %14 = vsyncpa [#allocation4], 0 }
   0x4   :  { %16 = vsyncpa [#allocation4 + $0x1], 0  ;;  %s778_s18 = smov 0   ;;  %s780_s19 = smov 0  }
   0x5   :  { %s782_s20 = smov 0   ;;  %s784_s21 = smov 0  }
   0x6 LB: > { %s799_s22 = sadd.s32 4294967295, %s738_s21   ;;  %s511_s23 = sadd.s32 4294967294, %s738_s21   ;;  %s738_s21 = sphi %s784_s21, %s1032_s21   ;;  %s734_s20 = sphi %s782_s20, %s1031_s20   ;;  %s730_s19 = sphi %s780_s19, %s1030_s19   ;;  %s726_s18 = sphi %s778_s18, %s1029_s18  }
   0x7   : > { %s803_s24 = sadd.s32 1, %s738_s21   ;;  %s29_s25 = sadd.s32 1, %s734_s20 }
   0x8   : > { %s26_s26 = ssub.s32 %s738_s21, %s803_s24  ;;  %p36_p0 = scmp.ne.s32.totalorder %s734_s20, %s730_s19 }
   0x9   : > { %p27_p1 = scmp.eq.s32.totalorder %s26_s26, 0  ;;  %p37_p2 = scmp.eq.s32.totalorder %s738_s21, 0 }
   0xa   : > { %p42_p3 = scmp.ne.s32.totalorder %s730_s19, %s726_s18  ;;  %p1014_p4 = scmp.eq.s32.totalorder %s799_s22, 0 }
   0xb   : > { %s815_s27 = scalar_select %p27_p1, %s734_s20, %s29_s25  }
   0xc   : > { %p817_p5 = por %p37_p2, %p36_p0  ;;  %p823_p6 = por %p1014_p4, %p42_p3 }
   0xd   : > { %p150_p7 = scmp.eq.s32.totalorder %s799_s22, 1  ;;  %p156_p8 = scmp.eq.s32.totalorder %s511_s23, 1 }
   0xe   : > { %s1017_s29 = scalar_select %p823_p6, 1, 0 }
   0xf   : > { %p512_p9 = scmp.ge.s32.totalorder %s738_s21, 1  ;;  %p163_p10 = scmp.lt.s32.totalorder %s738_s21, 3 }
  0x10   : > { %p830_p11 = por %p150_p7, %p36_p0  ;;  %p834_p12 = por %p156_p8, %p42_p3 }
  0x11   : > { %p838_p13 = pnand %p512_p9, %p163_p10  ;;  %s185_s10 = sshll.u32 %s1011_s4, 4  ;;  %s186_s10 = int_to_ptr.vmem [resolvable:$true] %s185_s10 }
  0x12   : > { %s1018_s30 = scalar_select %p830_p11, 1, 0 }
  0x13   : > { %s1019_s6 = scalar_select %p834_p12, 1, 0 }
  0x14   : > { %p559_p1 = pneg %p838_p13  ;;  %p572_p2 = scmp.lt.s32.totalorder %s738_s21, 2 }
  0x15   : > { %s196_s12 = sand.u32 1, %s734_s20   ;;  %s623_s15 = scalar_lea.vmem %s186_s10, 16 }
  0x16   : > { %p851_p7 = pnand %p559_p1, %p1014_p4  ;;  %p858_p3 = pnand %p572_p2, %p817_p5 }
  0x17   : > { %s515_s14 = sshll.u32 %s196_s12, 5  ;;  %p624_p8 = scmp.ne.s32.totalorder %s186_s10, %s623_s15 }
  0x18   : > { %p625_p9 = pneg %p851_p7  ;;  %p631_p12 = scmp.lt.s32.totalorder %s186_s10, %s186_s10 }
  0x19   : > { %p632_p11 = scmp.lt.s32.totalorder %s623_s15, %s623_s15 }
  0x1a   : > { %p626_p10 = pnand %p625_p9, %p624_p8 }
  0x1b   : > { %p633_p1 = por %p632_p11, %p631_p12 }
  0x1c   : > { %p627_p0 = pneg %p626_p10 }
  0x1e   : > { %p634_p4 = pnand %p633_p1, %p627_p0 }
  0x20   : > { %637 = shalt.err (!%p634_p4)
}
  0x21   : > { %s740_s16 = smov [#allocation6]   ;;  %s532_s17 = sshll.u32 %s738_s21, 9 }
  0x22   : > { %562 = dma.vmem_to_smem (!%p851_p7), %s186_s10, 16, %s740_s16, [#allocation5]  }
  0x23   : > { %s200_s23 = scalar_lea.vmem [#allocation2], %s515_s14  ;;  %s870_s8 = scalar_lea.hbm %s1007_s0, %s532_s17 }
  0x24   : > { %s207_s25 = sshll.u32 %s200_s23, 4  ;;  %s874_s9 = scalar_lea.sflag [#allocation3], %s196_s12  ;;  %s872_s25 = int_to_ptr.vmem [resolvable:$true] %s207_s25 }
  0x25   : > { %s638_s11 = scalar_lea.hbm %s870_s8, 512  ;;  %p640_p5 = pneg %p858_p3 }
  0x26   : > { %p639_p4 = scmp.ne.s32.totalorder %s870_s8, %s638_s11  ;;  %s643_s15 = scalar_lea.hbm %s1007_s0, 1024 }
  0x27   : > { %p644_p0 = scmp.lt.u32.totalorder %s870_s8, %s1007_s0  ;;  %p645_p2 = scmp.lt.u32.totalorder %s643_s15, %s638_s11 }
  0x28   : > { %p641_p11 = pnand %p640_p5, %p639_p4  ;;  %p647_p8 = scmp.lt.u32.totalorder %s638_s11, %s870_s8 }
  0x29   : > { %p646_p7 = por %p645_p2, %p644_p0 }
  0x2a   : > { %p642_p12 = pneg %p641_p11 }
  0x2b   : > { %p648_p9 = por %p647_p8, %p646_p7 }
  0x2d   : > { %p649_p10 = pnand %p648_p9, %p642_p12 }
  0x2f   : > { %652 = shalt.err (!%p649_p10)
}
  0x30   : > { %s653_s12 = scalar_lea.vmem %s872_s25, 512  ;;  %s741_s23 = smov [#allocation2]  }
  0x31   : > { %p654_p1 = scmp.ne.s32.totalorder %s872_s25, %s653_s12  ;;  %s658_s26 = sshll.u32 %s741_s23, 4  ;;  %s659_s26 = int_to_ptr.vmem [resolvable:$false] %s658_s26 }
  0x32   : > { %s660_s28 = scalar_lea.vmem %s659_s26, 1024  ;;  %p661_p6 = scmp.lt.s32.totalorder %s872_s25, %s659_s26 }
  0x33   : > { %p656_p4 = pnand %p654_p1, %p640_p5  ;;  %p662_p0 = scmp.lt.s32.totalorder %s660_s28, %s653_s12 }
  0x35   : > { %p657_p11 = pneg %p656_p4  ;;  %p663_p2 = por %p662_p0, %p661_p6 }
  0x37   : > { %p664_p7 = pnand %p663_p2, %p657_p11 }
  0x39   : > { %667 = shalt.err (!%p664_p7)
}
  0x3a   : > { %s742_s11 = smov 256   ;;  %s743_s10 = smov 16  }
  0x3b   : > { %566 = dma.hbm_to_vmem [thread:$0]  (!%p858_p3), %s870_s8, 512, %s872_s25, %s874_s9, %s742_s11, %s742_s11, %s743_s10  }
  0x3c   : > { %219 = sbr.rel (%p838_p13) target bundleno = 621 (0x26d), region = 40  ;;  %s905_s14 = sand.u32 (!%p838_p13), 1, %s730_s19  }
  0x3d   : > { %s519_s15 = sshll.u32 (!%p838_p13), %s905_s14, 5  ;;  %s222_s16 = scalar_lea.sflag (!%p838_p13), [#allocation3], %s905_s14 }
  0x3e   : > { %s225_s17 = scalar_lea.vmem (!%p838_p13), [#allocation2], %s519_s15  ;;  %p1023_p6 = scmp.ne.s32.totalorder (!%p838_p13), %s1017_s29, 0 }
  0x43   : > { %713 = dma.done.wait (%p1023_p6), %s222_s16, 512  }
  0x44   : > { %715 = vsyncadd (%p1023_p6), %s222_s16, 4294966784  ;;  %p1024_p3 = scmp.eq.s32.totalorder %s799_s22, 0 }
  0x46   : > { %717 = dma.done.wait (%p1024_p3), [#allocation5], 16   ;;  %p1025_p13 = pmov %p1024_p3 }
  0x48   : > { %719 = vsyncadd (%p1025_p13), [#allocation5], 4294967280 }
  0x49   : > { %234 = sfence }
  0x4a   : > { %v919_v0 = vld [vmem:[%s225_s17] sm:$0xff]  ;;  %v921_v1 = vld [vmem:[%s225_s17 + $0x8] sm:$0xff]  ;;  %v923_v2 = vld [vmem:[%s225_s17 + $0x10] sm:$0xff]  ;;  %vm294_vm0 = vcmask 130048   ;;  %vm273_vm1 = vcmask 7168   ;;  %v744_v20 = vmov 0  }
  0x4b   : > { %v261_v3 = vadd.f32 %v921_v1, %v919_v0  ;;  %v927_v4 = vld [vmem:[%s225_s17 + $0x18] sm:$0xff]  ;;  %v290_v6 = vld [vmem:[%s1009_s2] sm:$0xff]  ;;  %v270_v10 = vld [vmem:[%s1008_s1 + $0x8] sm:$0xff]  ;;  %614 = vset.pattern.permute.xlu0 %v744_v20  ;;  %613 = vset.pattern.permute.xlu1 %v744_v20  ;;  %s287_s26 = sld [smem:[#allocation6]]  ;;  %s524_s28 = sld [smem:[#allocation6 + $0x1]] }
  0x4c   : > { %v264_v5 = vadd.f32 %v927_v4, %v923_v2  ;;  %542 = vmatprep.mubr.msk.f32.mxu0 %vm294_vm0, %v290_v6  ;;  %v269_v9 = vld [vmem:[%s1008_s1] sm:$0xff]  ;;  %v291_v19 = vld [vmem:[%s1009_s2 + $0x8] sm:$0xff]  ;;  %s256_s7 = scalar_lea.vmem [#allocation7], %s519_s15  ;;  %s533_s25 = sshll.u32 %s799_s22, 9 }
  0x4d   : > { %262 = vadd.xlane.f32.xlu0 %v261_v3  ;;  %v293_v30 = vld [vmem:[%s1010_s3 + $0x8] sm:$0xff]  ;;  %v292_v31 = vld [vmem:[%s1010_s3] sm:$0xff]  ;;  %s426_s13 = sshll.u32 %s256_s7, 4  ;;  %s961_s12 = scalar_lea.hbm %s1012_s5, %s533_s25  ;;  %s954_s13 = int_to_ptr.vmem [resolvable:$true] %s426_s13 }
  0x4e   : > { %s413_s22 = scalar_lea.sflag [#allocation4], %s905_s14  ;;  %s668_s15 = scalar_lea.vmem %s954_s13, 512 }
  0x4f   : > { %p669_p5 = scmp.ne.s32.totalorder %s954_s13, %s668_s15  ;;  %p1026_p12 = scmp.ne.s32.totalorder %s1018_s30, 0 }
  0x50   : > { %s745_s23 = smov [#allocation7]  }
  0x51   : > { %265 = vadd.xlane.f32.xlu0 %v264_v5  ;;  %v288_v29 = vstv %s287_s26  ;;  %v379_v36 = vstv %s524_s28  ;;  %p670_p8 = pnand %p669_p5, %p1026_p12  ;;  %s672_s26 = sshll.u32 %s745_s23, 4  ;;  %s673_s26 = int_to_ptr.vmem [resolvable:$false] %s672_s26 }
  0x52   : > { %s674_s28 = scalar_lea.vmem %s673_s26, 1024  ;;  %p675_p10 = scmp.lt.s32.totalorder %s954_s13, %s673_s26 }
  0x53   : > { %p671_p9 = pneg %p670_p8  ;;  %p676_p1 = scmp.lt.s32.totalorder %s674_s28, %s668_s15 }
  0x55   : > { %p677_p4 = por %p676_p1, %p675_p10 }
  0x57   : > { %p678_p11 = pnand %p677_p4, %p671_p9 }
  0xda   : > { %v263_v7 = vpop.xlane.xlu0 %262 }
  0xdb   : > { %v267_v8 = vmul.f32 0.00390625, %v263_v7 }
  0xdd   : > { %v271_v12 = vmul.f32 %v269_v9, %v267_v8 }
  0xde   : > { %v266_v11 = vpop.xlane.xlu0 %265 }
  0xdf   : > { %v268_v13 = vmul.f32 0.00390625, %v266_v11  ;;  %v274_v16 = vsel %vm273_vm1, %v271_v12, 0.0 }
  0xe1   : > { %v272_v14 = vmul.f32 %v270_v10, %v268_v13  ;;  %v545_v15 = vpack.c.bf16 %v268_v13, %v267_v8 }
  0xe3   : > { %546 = vmatprep.subr.bf16.mxu0 %v545_v15  ;;  %v275_v17 = vsel %vm273_vm1, %v272_v14, 0.0 }
  0xe4   : > { %548 = vmatpush3.bf16.msra.mxu0 %v545_v15  ;;  %v276_v18 = vadd.f32 %v275_v17, %v274_v16 }
  0xe6   : > { %277 = vadd.xlane.f32.xlu1 %v276_v18 }
  0xe7   : > { %543 = vmatmul.mubr.msk.f32.vlgmr.msra.gmra.mrb[0].mxu0 %vm294_vm0, %v291_v19 }
 0x173   : > { %v278_v21 = vpop.xlane.xlu1 %277 }
 0x174   : > { %v279_v22 = vrot.slane %v278_v21, 4 }
 0x176   : > { %v280_v23 = vadd.f32 %v279_v22, %v278_v21 }
 0x178   : > { %v281_v24 = vrot.slane %v280_v23, 2 }
 0x17a   : > { %v282_v25 = vadd.f32 %v281_v24, %v280_v23 }
 0x17c   : > { %v283_v26 = vrot.slane %v282_v25, 1 }
 0x17e   : > { %v284_v27 = vadd.f32 %v283_v26, %v282_v25 }
 0x180   : > { %549 = vpush %v284_v27 }
 0x1b1   : > { %s550_s11 = spop %549 }
 0x1b2   : > { %v286_v28 = vstv %s550_s11 }
 0x1b3   : > { %v289_v33 = vadd.f32 %v288_v29, %v286_v28 }
 0x1ba   : > { %v544_v32 = vpop.f32.mrb[0].mxu0 }
 0x1bb   : > { %v373_v34 = vadd.f32 %v544_v32, %v293_v30  ;;  %v367_v35 = vpop.f32.mrb[1].mxu0 }
 0x1bc   : > { %v368_v37 = vadd.f32 %v367_v35, %v292_v31 }
 0x1bd   : > { %v377_v38 = vmul.f32 %v373_v34, %v289_v33 }
 0x1be   : > { %v376_v39 = vmul.f32 %v368_v37, %v289_v33 }
 0x1bf   : > { %v381_v40 = vadd.f32 %v379_v36, %v377_v38 }
 0x1c0   : > { %v380_v41 = vadd.f32 %v379_v36, %v376_v39 }
 0x1c1   : > { %v526_v42 = vmul.f32 -1.442695, %v381_v40 }
 0x1c2   : > { %v525_v43 = vmul.f32 -1.442695, %v380_v41 }
 0x1c3   : > { %615 = vpow2.f32 %v526_v42 }
 0x1c4   : > { %617 = vpow2.f32 %v525_v43 }
 0x1cd   : > { %v616_v44 = vpop.eup %615 }
 0x1ce   : > { %v618_v45 = vpop.eup %617  ;;  %v389_v46 = vadd.f32 1.0, %v616_v44 }
 0x1cf   : > { %v388_v47 = vadd.f32 1.0, %v618_v45 }
 0x1d0   : > { %619 = vrcp.f32 %v389_v46 }
 0x1d1   : > { %621 = vrcp.f32 %v388_v47 }
 0x1da   : > { %v620_v48 = vpop.eup %619 }
 0x1db   : > { %v622_v49 = vpop.eup %621  ;;  %401 = vperm.xlu0 %614, %v620_v48  }
 0x1dc   : > { %396 = vperm.xlu1 %613, %v622_v49  }
 0x25a   : > { %v402_v50 = vpop.permute.xlu0 %401 }
 0x25b   : > { %v406_v51 = vmul.f32 %v402_v50, %v923_v2  ;;  %v407_v52 = vmul.f32 %v402_v50, %v927_v4  ;;  %v397_v53 = vpop.permute.xlu1 %396 }
 0x25c   : > { %v404_v54 = vmul.f32 %v397_v53, %v919_v0  ;;  %v405_v55 = vmul.f32 %v397_v53, %v921_v1 }
 0x25d   : > { %410 = vst [vmem:[%s256_s7 + $0x10] sm:$0xff] %v406_v51  ;;  %411 = vst [vmem:[%s256_s7 + $0x18] sm:$0xff] %v407_v52 }
 0x25e   : > { %408 = vst [vmem:[%s256_s7] sm:$0xff] %v404_v54  ;;  %409 = vst [vmem:[%s256_s7 + $0x8] sm:$0xff] %v405_v55 }
 0x25f   : > { %681 = shalt.err (!%p678_p11)
}
 0x260   : > { %s682_s11 = scalar_lea.hbm %s961_s12, 512  ;;  %s686_s17 = scalar_lea.hbm %s1012_s5, 1024 }
 0x261   : > { %p683_p0 = scmp.ne.s32.totalorder %s961_s12, %s682_s11  ;;  %p687_p6 = scmp.lt.u32.totalorder %s961_s12, %s1012_s5 }
 0x262   : > { %p688_p3 = scmp.lt.u32.totalorder %s686_s17, %s682_s11  ;;  %p690_p5 = scmp.lt.u32.totalorder %s682_s11, %s961_s12 }
 0x263   : > { %p684_p2 = pnand %p683_p0, %p1026_p12 }
 0x264   : > { %p689_p13 = por %p688_p3, %p687_p6 }
 0x265   : > { %p685_p7 = pneg %p684_p2 }
 0x266   : > { %p691_p8 = por %p690_p5, %p689_p13 }
 0x268   : > { %p692_p9 = pnand %p691_p8, %p685_p7 }
 0x26a   : > { %695 = shalt.err (!%p692_p9)
}
 0x26b   : > { %s746_s25 = smov 256   ;;  %s747_s8 = smov 16  }
 0x26c   : > { %557 = dma.vmem_to_hbm [thread:$0]  (%p1026_p12), %s954_s13, 512, %s961_s12, %s413_s22, %s746_s25, %s746_s25, %s747_s8  }
 0x26d PF: > { %s441_s9 = sand.u32 1, %s726_s18   ;;  %p1027_p10 = scmp.ne.s32.totalorder %s1019_s6, 0 }
 0x26e   : > { %p1028_p1 = scmp.ge.s32.totalorder %s738_s21, 2  ;;  %s442_s15 = scalar_lea.sflag [#allocation4], %s441_s9 }
 0x270   : > { %p568_p4 = pnand %p1028_p1, %p1027_p10 }
 0x272   : > { %721 = dma.done.wait (!%p568_p4), %s442_s15, 512  }
 0x273   : > { %723 = vsyncadd (!%p568_p4), %s442_s15, 4294966784  ;;  %p19_p11 = scmp.ge.s32.totalorder %s803_s24, 4   ;;  %s1029_s18 = smov %s730_s19 }
 0x274   : > { %s1030_s19 = smov %s734_s20  ;;  %s1031_s20 = smov %s815_s27 }
 0x275   : > { %s1032_s21 = smov %s803_s24  ;;  %21 = sbr.rel (!%p19_p11) target bundleno = 6 (0x6), region = 90 }
 0x27c   :  { %447 = vsyncpa [#allocation3], 1 }
 0x27d   :  { %449 = vsyncpa [#allocation3 + $0x1], 1 }
 0x27e   :  { %450 = vsyncpa [#allocation4], 1 }
 0x27f   :  { %452 = vsyncpa [#allocation4 + $0x1], 1 }
 0x280   :  { %453 = vsyncpa [#allocation5], 1 }
 0x281   :  { %455 = vsyncpa [#allocation5 + $0x1], 1 }

</bundles_post_ra>
